<compile_context>
chip_gen: v7x
topology: tpu7x:2x2x1
jax: 0.10.0
libtpu: 0.0.40
codegen_flags: <defaults>
</compile_context>

<pallas_src>
import jax
import jax.numpy as jnp
from jax.experimental import pallas as pl
from jax.experimental.pallas import tpu as pltpu

STATE_SIZE = 9
ACTION_SIZE = 3
HIDDEN = 128
K_PAD = 16       # fc1 input padded 9 -> 16 for an MXU-friendly bf16 pass
OUT_PAD = 8      # mu output padded 3 -> 8 lanes (narrow output writeback)


def _round_up(x, m):
    return ((x + m - 1) // m) * m


def actor_kernel(x_ref, w1_ref, b1_ref, w2_ref, b2_ref, w3_ref, b3_ref, out_ref):
    # fc1 + relu: bf16 MXU matmul (K padded to 16), f32 accumulation, f32 bias/relu.
    h1 = jnp.dot(x_ref[...], w1_ref[...],
                 preferred_element_type=jnp.float32) + b1_ref[...]
    h1 = jnp.maximum(h1, 0.0)

    # fc2 + relu: bf16 MXU matmul, f32 accumulation, f32 bias/relu.
    h2 = jnp.dot(h1.astype(jnp.bfloat16), w2_ref[...],
                 preferred_element_type=jnp.float32) + b2_ref[...]
    h2 = jnp.maximum(h2, 0.0)

    # mu + tanh: narrow 8-lane result; bias/tanh only on the kept lanes.
    mu = jnp.dot(h2.astype(jnp.bfloat16), w3_ref[...],
                 preferred_element_type=jnp.float32) + b3_ref[...]
    out_ref[...] = jnp.tanh(mu)


def actor_forward(state, packed_params, block_b=2048):
    """state: (B, 9) f32. packed_params from pack_params(). Returns (B, 3) f32."""
    w1p, b1, w2, b2, w3p, b3p = packed_params
    B = state.shape[0]

    # Pad batch only to a multiple of 8 (sublane) and K to 16; bf16 for the MXU.
    b_pad = _round_up(B, 8)
    xp = jnp.pad(state, ((0, b_pad - B), (0, K_PAD - STATE_SIZE))).astype(jnp.bfloat16)

    # Batch tile: <= block_b, a multiple of 8, and <= b_pad.
    bt = min(block_b, b_pad)
    bt = max(8, (bt // 8) * 8)
    grid = (pl.cdiv(b_pad, bt),)          # partial last tile handled by Pallas

    const = lambda i: (0, 0)              # weights/biases stay resident across steps
    out = pl.pallas_call(
        actor_kernel,
        out_shape=jax.ShapeDtypeStruct((b_pad, OUT_PAD), jnp.float32),
        grid=grid,
        in_specs=[
            pl.BlockSpec((bt, K_PAD), lambda i: (i, 0)),        # x        (bf16)
            pl.BlockSpec((K_PAD, HIDDEN), const),               # w1 pad   (bf16)
            pl.BlockSpec((1, HIDDEN), const),                   # b1       (f32)
            pl.BlockSpec((HIDDEN, HIDDEN), const),              # w2       (bf16)
            pl.BlockSpec((1, HIDDEN), const),                   # b2       (f32)
            pl.BlockSpec((HIDDEN, OUT_PAD), const),             # w3 pad   (bf16)
            pl.BlockSpec((1, OUT_PAD), const),                  # b3 pad   (f32)
        ],
        out_specs=pl.BlockSpec((bt, OUT_PAD), lambda i: (i, 0)),
        compiler_params=pltpu.CompilerParams(
            dimension_semantics=("parallel",)),
    )(xp, w1p, b1, w2, b2, w3p, b3p)

    return out[:B, :ACTION_SIZE]


def init_params(key):
    """torch.nn.Linear default init: U(-1/sqrt(fan_in), 1/sqrt(fan_in)); W stored (in, out)."""
    def linear(key, fan_in, fan_out):
        kw, kb = jax.random.split(key)
        bound = 1.0 / jnp.sqrt(float(fan_in))
        w = jax.random.uniform(kw, (fan_in, fan_out), jnp.float32, -bound, bound)
        b = jax.random.uniform(kb, (1, fan_out), jnp.float32, -bound, bound)
        return w, b

    k1, k2, k3 = jax.random.split(key, 3)
    w1, b1 = linear(k1, STATE_SIZE, HIDDEN)
    w2, b2 = linear(k2, HIDDEN, HIDDEN)
    w3, b3 = linear(k3, HIDDEN, ACTION_SIZE)
    return (w1, b1, w2, b2, w3, b3)


def pack_params(params):
    """Kernel layout: all weights bf16; fc1 K-padded 9->16; mu zero-padded to 8 lanes."""
    w1, b1, w2, b2, w3, b3 = params
    w1p = jnp.zeros((K_PAD, HIDDEN), jnp.float32).at[:STATE_SIZE, :].set(w1)
    w3p = jnp.zeros((HIDDEN, OUT_PAD), jnp.float32).at[:, :ACTION_SIZE].set(w3)
    b3p = jnp.zeros((1, OUT_PAD), jnp.float32).at[:, :ACTION_SIZE].set(b3)
    return (w1p.astype(jnp.bfloat16), b1,
            w2.astype(jnp.bfloat16), b2,
            w3p.astype(jnp.bfloat16), b3p)


def reference_forward(state, params):
    """Pure-JAX f32 reference (matches the PyTorch module semantics)."""
    w1, b1, w2, b2, w3, b3 = params
    h1 = jnp.maximum(state @ w1 + b1, 0.0)
    h2 = jnp.maximum(h1 @ w2 + b2, 0.0)
    return jnp.tanh(h2 @ w3 + b3)


if __name__ == "__main__":
    key = jax.random.PRNGKey(0)
    kp, kx, kx2 = jax.random.split(key, 3)
    params = init_params(kp)
    packed = pack_params(params)

    # Small shape consistent with the module: batch=2, state_size=9.
    batch = 2
    state = jax.random.normal(kx, (batch, STATE_SIZE), jnp.float32)
    out = jax.block_until_ready(actor_forward(state, packed))
    ref = reference_forward(state, params)
    assert out.shape == (batch, ACTION_SIZE)
    # bf16 weights *and* activations in all three layers -> loosened tolerance.
    assert jnp.allclose(out, ref, atol=2e-2, rtol=0.0), "mismatch vs reference (B=2)"

    # Multi-step grid with a partial last tile (B=20 -> b_pad=24, bt=16 -> grid=2).
    state2 = jax.random.normal(kx2, (20, STATE_SIZE), jnp.float32)
    out2 = jax.block_until_ready(actor_forward(state2, packed, block_b=16))
    ref2 = reference_forward(state2, params)
    assert out2.shape == (20, ACTION_SIZE)
    assert jnp.allclose(out2, ref2, atol=2e-2, rtol=0.0), "mismatch vs reference (B=20)"

    print("KERNEL_OK")
</pallas_src>

<mosaic_0001>
module attributes {stable_mosaic.version = 11 : i64} {
  func.func @actor_kernel(%arg0: i32, %arg1: memref<8x16xbf16, #tpu.memory_space<vmem>>, %arg2: memref<16x128xbf16, #tpu.memory_space<vmem>>, %arg3: memref<1x128xf32, #tpu.memory_space<vmem>>, %arg4: memref<128x128xbf16, #tpu.memory_space<vmem>>, %arg5: memref<1x128xf32, #tpu.memory_space<vmem>>, %arg6: memref<128x8xbf16, #tpu.memory_space<vmem>>, %arg7: memref<1x8xf32, #tpu.memory_space<vmem>>, %arg8: memref<8x8xf32, #tpu.memory_space<vmem>>) attributes {dimension_semantics = [#tpu.dimension_semantics<parallel>], iteration_bounds = array<i64: 1>, scalar_prefetch = 0 : i64, scratch_operands = 0 : i64, tpu.core_type = #tpu.core_type<tc>, window_params = [{transform_indices = @transform_0, window_bounds = array<i64: 8, 16>}, {pipeline_mode = #tpu.pipeline_mode<synchronous>, transform_indices = @transform_1, window_bounds = array<i64: 16, 128>}, {pipeline_mode = #tpu.pipeline_mode<synchronous>, transform_indices = @transform_2, window_bounds = array<i64: 1, 128>}, {pipeline_mode = #tpu.pipeline_mode<synchronous>, transform_indices = @transform_3, window_bounds = array<i64: 128, 128>}, {pipeline_mode = #tpu.pipeline_mode<synchronous>, transform_indices = @transform_4, window_bounds = array<i64: 1, 128>}, {pipeline_mode = #tpu.pipeline_mode<synchronous>, transform_indices = @transform_5, window_bounds = array<i64: 128, 8>}, {pipeline_mode = #tpu.pipeline_mode<synchronous>, transform_indices = @transform_6, window_bounds = array<i64: 1, 8>}, {transform_indices = @transform_7, window_bounds = array<i64: 8, 8>}]} {
    %c0 = arith.constant 0 : index
    %c0_0 = arith.constant 0 : index
    %0 = vector.load %arg1[%c0, %c0_0] : memref<8x16xbf16, #tpu.memory_space<vmem>>, vector<8x16xbf16>
    %c0_1 = arith.constant 0 : index
    %c0_2 = arith.constant 0 : index
    %1 = vector.load %arg2[%c0_1, %c0_2] : memref<16x128xbf16, #tpu.memory_space<vmem>>, vector<16x128xbf16>
    %cst = arith.constant dense<0.000000e+00> : vector<8x128xf32>
    %2 = tpu.matmul %0, %1, %cst {dimension_numbers = #tpu.dot_dimension_numbers<[1], [0], [0], [1], [0, 0, 1, 1], [], []>} : vector<8x16xbf16>, vector<16x128xbf16>, vector<8x128xf32> -> vector<8x128xf32>
    %c0_3 = arith.constant 0 : index
    %c0_4 = arith.constant 0 : index
    %3 = vector.load %arg3[%c0_3, %c0_4] : memref<1x128xf32, #tpu.memory_space<vmem>>, vector<1x128xf32>
    %4 = vector.broadcast %3 : vector<1x128xf32> to vector<8x128xf32>
    %5 = arith.addf %2, %4 : vector<8x128xf32>
    %cst_5 = arith.constant 0.000000e+00 : f32
    %6 = vector.broadcast %cst_5 : f32 to vector<8x128xf32>
    %7 = arith.maximumf %5, %6 : vector<8x128xf32>
    %8 = arith.truncf %7 : vector<8x128xf32> to vector<8x128xbf16>
    %c0_6 = arith.constant 0 : index
    %c0_7 = arith.constant 0 : index
    %9 = vector.load %arg4[%c0_6, %c0_7] : memref<128x128xbf16, #tpu.memory_space<vmem>>, vector<128x128xbf16>
    %cst_8 = arith.constant dense<0.000000e+00> : vector<8x128xf32>
    %10 = tpu.matmul %8, %9, %cst_8 {dimension_numbers = #tpu.dot_dimension_numbers<[1], [0], [0], [1], [0, 0, 1, 1], [], []>} : vector<8x128xbf16>, vector<128x128xbf16>, vector<8x128xf32> -> vector<8x128xf32>
    %c0_9 = arith.constant 0 : index
    %c0_10 = arith.constant 0 : index
    %11 = vector.load %arg5[%c0_9, %c0_10] : memref<1x128xf32, #tpu.memory_space<vmem>>, vector<1x128xf32>
    %12 = vector.broadcast %11 : vector<1x128xf32> to vector<8x128xf32>
    %13 = arith.addf %10, %12 : vector<8x128xf32>
    %cst_11 = arith.constant 0.000000e+00 : f32
    %14 = vector.broadcast %cst_11 : f32 to vector<8x128xf32>
    %15 = arith.maximumf %13, %14 : vector<8x128xf32>
    %16 = arith.truncf %15 : vector<8x128xf32> to vector<8x128xbf16>
    %c0_12 = arith.constant 0 : index
    %c0_13 = arith.constant 0 : index
    %17 = vector.load %arg6[%c0_12, %c0_13] : memref<128x8xbf16, #tpu.memory_space<vmem>>, vector<128x8xbf16>
    %cst_14 = arith.constant dense<0.000000e+00> : vector<8x8xf32>
    %18 = tpu.matmul %16, %17, %cst_14 {dimension_numbers = #tpu.dot_dimension_numbers<[1], [0], [0], [1], [0, 0, 1, 1], [], []>} : vector<8x128xbf16>, vector<128x8xbf16>, vector<8x8xf32> -> vector<8x8xf32>
    %c0_15 = arith.constant 0 : index
    %c0_16 = arith.constant 0 : index
    %19 = vector.load %arg7[%c0_15, %c0_16] : memref<1x8xf32, #tpu.memory_space<vmem>>, vector<1x8xf32>
    %20 = vector.broadcast %19 : vector<1x8xf32> to vector<8x8xf32>
    %21 = arith.addf %18, %20 : vector<8x8xf32>
    %22 = math.tanh %21 : vector<8x8xf32>
    %c0_17 = arith.constant 0 : index
    %c0_18 = arith.constant 0 : index
    %23 = vector.load %arg8[%c0_17, %c0_18] : memref<8x8xf32, #tpu.memory_space<vmem>>, vector<8x8xf32>
    tpu.vector_store %arg8[%c0_17, %c0_18], %22 {strides = array<i32>} : memref<8x8xf32, #tpu.memory_space<vmem>>, vector<8x8xf32>,
    return
  }
  func.func @transform_0(%arg0: i32) -> (i32, i32) {
    %c0_i32 = arith.constant 0 : i32
    %c0_i32_0 = arith.constant 0 : i32
    return %arg0, %c0_i32 : i32, i32
  }
  func.func @transform_1(%arg0: i32) -> (i32, i32) {
    %c0_i32 = arith.constant 0 : i32
    %c0_i32_0 = arith.constant 0 : i32
    %c0_i32_1 = arith.constant 0 : i32
    return %c0_i32, %c0_i32_0 : i32, i32
  }
  func.func @transform_2(%arg0: i32) -> (i32, i32) {
    %c0_i32 = arith.constant 0 : i32
    %c0_i32_0 = arith.constant 0 : i32
    %c0_i32_1 = arith.constant 0 : i32
    return %c0_i32, %c0_i32_0 : i32, i32
  }
  func.func @transform_3(%arg0: i32) -> (i32, i32) {
    %c0_i32 = arith.constant 0 : i32
    %c0_i32_0 = arith.constant 0 : i32
    %c0_i32_1 = arith.constant 0 : i32
    return %c0_i32, %c0_i32_0 : i32, i32
  }
  func.func @transform_4(%arg0: i32) -> (i32, i32) {
    %c0_i32 = arith.constant 0 : i32
    %c0_i32_0 = arith.constant 0 : i32
    %c0_i32_1 = arith.constant 0 : i32
    return %c0_i32, %c0_i32_0 : i32, i32
  }
  func.func @transform_5(%arg0: i32) -> (i32, i32) {
    %c0_i32 = arith.constant 0 : i32
    %c0_i32_0 = arith.constant 0 : i32
    %c0_i32_1 = arith.constant 0 : i32
    return %c0_i32, %c0_i32_0 : i32, i32
  }
  func.func @transform_6(%arg0: i32) -> (i32, i32) {
    %c0_i32 = arith.constant 0 : i32
    %c0_i32_0 = arith.constant 0 : i32
    %c0_i32_1 = arith.constant 0 : i32
    return %c0_i32, %c0_i32_0 : i32, i32
  }
  func.func @transform_7(%arg0: i32) -> (i32, i32) {
    %c0_i32 = arith.constant 0 : i32
    %c0_i32_0 = arith.constant 0 : i32
    return %arg0, %c0_i32 : i32, i32
  }
}

</mosaic_0001>

<bundles_post_ra>
// kernel: tpu_custom_call.1
= control target key start
LH: loop header
LB: loop body
LE: loop exit
PB: predicated region body
PF: predicated region fallthrough
CT: control target
= control target key end

     0   :  { %v464_v1 = vmov 0.0   ;;  %vm465_vm0 = vmmov 0   ;;  %vm44_vm1 = vcmask 130048   ;;  %s602_s0 = inlined_call_operand.vmem [shape: bf16[8,16], index: 0, kind: input, shape index: {}]   ;;  %s603_s1 = inlined_call_operand.vmem [shape: bf16[16,128], index: 1, kind: input, shape index: {}]   ;;  %s604_s2 = inlined_call_operand.vmem [shape: f32[1,128], index: 2, kind: input, shape index: {}]   ;;  %s605_s3 = inlined_call_operand.vmem [shape: bf16[128,128], index: 3, kind: input, shape index: {}]   ;;  %s606_s4 = inlined_call_operand.vmem [shape: f32[1,128], index: 4, kind: input, shape index: {}]   ;;  %s607_s5 = inlined_call_operand.vmem [shape: bf16[128,8], index: 5, kind: input, shape index: {}]   ;;  %s608_s6 = inlined_call_operand.vmem [shape: f32[1,8], index: 6, kind: input, shape index: {}]   ;;  %s609_s7 = inlined_call_operand.hbm [shape: f32[8,8], index: 7, kind: output, shape index: {}]  }
   0x1   :  { %v421_v0 = vld [vmem:[%s603_s1] sm:$0xff]   ;;  %372 = vmatprep.subr.bf16.mxu0 %v464_v1  ;;  %378 = vmatprep.subr.bf16.mxu1 %v464_v1  ;;  %v423_v4 = vld [vmem:[%s605_s3 + $0x8] sm:$0xff]   ;;  %v424_v5 = vld [vmem:[%s605_s3 + $0x10] sm:$0xff]  }
   0x2   :  { %v28_v2 = vld [vmem:[%s602_s0] sm:$0xf]  ;;  %373 = vmatpush3.bf16.msra.mxu0 %v421_v0  ;;  %374 = vmatprep.mubr.msk.bf16.mxu0 %vm465_vm0, %v464_v1  ;;  %v425_v6 = vld [vmem:[%s605_s3 + $0x18] sm:$0xff]  }
   0x3   :  { %v422_v3 = vld [vmem:[%s605_s3] sm:$0xff]   ;;  %394 = vmatprep.mubr.msk.bf16.mxu1 %vm465_vm0, %v464_v1  ;;  %398 = vmatprep.subr.bf16.mxu0 %v464_v1 }
   0x4   :  { %379 = vmatpush3.bf16.msra.mxu1 %v422_v3 }
   0x5   :  { %375 = vmatmul.mubr.msk.bf16.vlgmr.msra.gmra.mrb[0].mxu0 %vm44_vm1, %v28_v2  ;;  %380 = vmatprep.subr.bf16.mxu1 %v464_v1 }
   0x6   :  { %414 = vmatprep.mubr.msk.bf16.mxu0 %vm465_vm0, %v464_v1 }
   0x8   :  { %381 = vmatpush3.bf16.msra.mxu1 %v423_v4 }
   0x9   :  { %382 = vmatprep.subr.bf16.mxu1 %v464_v1 }
   0xc   :  { %383 = vmatpush3.bf16.msra.mxu1 %v424_v5 }
   0xd   :  { %384 = vmatprep.subr.bf16.mxu1 %v464_v1 }
   0xe   :  { %12 = vsyncpa [#allocation3], 0  ;;  %v426_v7 = vld [vmem:[%s605_s3 + $0x20] sm:$0xff]   ;;  %v427_v8 = vld [vmem:[%s605_s3 + $0x28] sm:$0xff]   ;;  %vm315_vm2 = vcmask 64512  }
   0xf   :  { %v428_v9 = vld [vmem:[%s605_s3 + $0x30] sm:$0xff]   ;;  %v429_v10 = vld [vmem:[%s605_s3 + $0x38] sm:$0xff]   ;;  %v430_v11 = vld [vmem:[%s607_s5] sm:$0xff]  }
  0x10   :  { %385 = vmatpush3.bf16.msra.mxu1 %v425_v6  ;;  %399 = vmatpush3.bf16.msra.mxu0 %v430_v11  ;;  %v431_v12 = vld [vmem:[%s607_s5 + $0x8] sm:$0xff]   ;;  %v432_v13 = vld [vmem:[%s607_s5 + $0x10] sm:$0xff]   ;;  %v433_v14 = vld [vmem:[%s607_s5 + $0x18] sm:$0xff]  }
  0x11   :  { %386 = vmatprep.subr.bf16.mxu1 %v464_v1  ;;  %400 = vmatprep.subr.bf16.mxu0 %v464_v1  ;;  %v434_v15 = vld [vmem:[%s607_s5 + $0x20] sm:$0xff]   ;;  %v435_v16 = vld [vmem:[%s607_s5 + $0x28] sm:$0xff]   ;;  %v436_v25 = vld [vmem:[%s607_s5 + $0x30] sm:$0xff]  }
  0x12   :  { %v331_v17 = vld [vmem:[%s604_s2] ss:$0 sm:$0xff]  ;;  %v437_v26 = vld [vmem:[%s607_s5 + $0x38] sm:$0xff]   ;;  %s466_s5 = smov [#allocation2]  }
  0x13   :  { %v334_v27 = vld [vmem:[%s606_s4] ss:$0 sm:$0xff]  ;;  %s323_s4 = sshll.u32 %s466_s5, 4  ;;  %s324_s4 = int_to_ptr.vmem [resolvable:$true] %s323_s4 }
  0x14   :  { %387 = vmatpush3.bf16.msra.mxu1 %v426_v7  ;;  %401 = vmatpush3.bf16.msra.mxu0 %v431_v12  ;;  %v343_v35 = vld [vmem:[%s608_s6] ss:$0 sm:$0xff]  ;;  %s440_s14 = scalar_lea.vmem %s324_s4, 128  ;;  %p445_p1 = scmp.lt.s32.totalorder %s324_s4, %s324_s4 }
  0x15   :  { %388 = vmatprep.subr.bf16.mxu1 %v464_v1  ;;  %402 = vmatprep.subr.bf16.mxu0 %v464_v1  ;;  %p441_p0 = scmp.ne.s32.totalorder %s324_s4, %s440_s14  ;;  %p446_p2 = scmp.lt.s32.totalorder %s440_s14, %s440_s14 }
  0x17   :  { %p447_p3 = por %p446_p2, %p445_p1 }
  0x18   :  { %389 = vmatpush3.bf16.msra.mxu1 %v427_v8  ;;  %403 = vmatpush3.bf16.msra.mxu0 %v432_v13 }
  0x19   :  { %390 = vmatprep.subr.bf16.mxu1 %v464_v1  ;;  %404 = vmatprep.subr.bf16.mxu0 %v464_v1  ;;  %p448_p4 = pnand %p447_p3, %p441_p0 }
  0x1c   :  { %391 = vmatpush3.bf16.msra.mxu1 %v428_v9  ;;  %405 = vmatpush3.bf16.msra.mxu0 %v433_v14 }
  0x1d   :  { %392 = vmatprep.subr.bf16.mxu1 %v464_v1  ;;  %406 = vmatprep.subr.bf16.mxu0 %v464_v1 }
  0x20   :  { %393 = vmatpush3.bf16.msra.mxu1 %v429_v10  ;;  %407 = vmatpush3.bf16.msra.mxu0 %v434_v15 }
  0x21   :  { %408 = vmatprep.subr.bf16.mxu0 %v464_v1 }
  0x24   :  { %409 = vmatpush3.bf16.msra.mxu0 %v435_v16 }
  0x25   :  { %410 = vmatprep.subr.bf16.mxu0 %v464_v1 }
  0x28   :  { %411 = vmatpush3.bf16.msra.mxu0 %v436_v25 }
  0x29   :  { %412 = vmatprep.subr.bf16.mxu0 %v464_v1 }
  0x2c   :  { %413 = vmatpush3.bf16.msra.mxu0 %v437_v26 }
  0xd8   :  { %v82_v18 = vpop.f32.mrb[0].mxu0 }
  0xd9   :  { %v83_v19 = vadd.f32 %v331_v17, %v82_v18  ;;  %v376_v20 = vpop.f32.mrb[1].mxu0 }
  0xda   :  { %v85_v21 = vpop.f32.mrb[2].mxu0 }
  0xdb   :  { %v88_v22 = vmax.f32 %v83_v19, 0.0  ;;  %v377_v23 = vpop.f32.mrb[3].mxu0 }
  0xdd   :  { %v89_v24 = vpack.c.bf16 %v88_v22, %v88_v22 }
  0xdf   :  { %395 = vmatmul.mubr.bf16.vlgmr.msra.gmra.mrb[0].mxu1 %v89_v24 }
 0x1b2   :  { %v195_v28 = vpop.f32.mrb[0].mxu1 }
 0x1b3   :  { %v196_v29 = vadd.f32 %v334_v27, %v195_v28  ;;  %v396_v30 = vpop.f32.mrb[1].mxu1 }
 0x1b4   :  { %v198_v31 = vpop.f32.mrb[2].mxu1 }
 0x1b5   :  { %v201_v32 = vmax.f32 %v196_v29, 0.0  ;;  %v397_v33 = vpop.f32.mrb[3].mxu1 }
 0x1b7   :  { %v202_v34 = vpack.c.bf16 %v201_v32, %v201_v32 }
 0x1b9   :  { %415 = vmatmul.mubr.bf16.vlgmr.msra.gmra.mrb[4].mxu0 %v202_v34 }
 0x28c   :  { %v308_v36 = vpop.f32.mrb[4].mxu0 }
 0x28d   :  { %v309_v37 = vadd.f32 %v343_v35, %v308_v36  ;;  %v416_v38 = vpop.f32.mrb[5].mxu0 }
 0x28e   :  { %v311_v39 = vpop.f32.mrb[6].mxu0 }
 0x28f   :  { %438 = vtanh.f32 %v309_v37  ;;  %v417_v40 = vpop.f32.mrb[7].mxu0 }
 0x299   :  { %v439_v41 = vpop.eup %438 }
 0x29a   :  { %316 = vst.msk [vmem:[#allocation2] sm:$0xff] %vm315_vm2, %v439_v41 }
 0x29b   :  { %451 = shalt.err (!%p448_p4)
}
 0x29c   :  { %s452_s16 = scalar_lea.hbm %s609_s7, 128 }
 0x29d   :  { %p453_p5 = scmp.ne.s32.totalorder %s609_s7, %s452_s16  ;;  %p456_p6 = scmp.lt.u32.totalorder %s452_s16, %s609_s7 }
 0x29f   :  { %p458_p7 = pnand %p456_p6, %p453_p5 }
 0x2a1   :  { %461 = shalt.err (!%p458_p7)
}
 0x2a2   :  { %326 = dma.vmem_to_hbm [thread:$0]  %s324_s4, 128, %s609_s7, [#allocation3]  }
 0x2a3   :  { %462 = dma.done.wait [#allocation3], 128  }
 0x2a4   :  { %463 = vsyncadd [#allocation3], 4294967168 }
 0x2a5   :  { %330 = vsyncpa [#allocation3], 1 }

</bundles_post_ra>
